<compile_context>
chip_gen: v5e
topology: v5e:2x2
jax: 0.10.0
libtpu: 0.0.40
codegen_flags: <defaults>
</compile_context>

<pallas_src>
import jax
import jax.numpy as jnp
from jax.experimental import pallas as pl
from jax.experimental.pallas import tpu as pltpu

STATE_DIM = 2
ACTION_DIM = 2
IN_DIM = STATE_DIM + ACTION_DIM
HIDDEN_DIM = 256
OUT_LANES = 128   # layer-3 output padded to one full lane group (lane 0 is the real output)


def _discriminator_kernel(x_ref, w1_ref, b1_ref, w2_ref, b2_ref, w3_ref, b3_ref, o_ref):
    # Layer 1: single merged K=4 matmul, kept in f32 (negligible MXU cost, better parity).
    h1 = jnp.dot(x_ref[...], w1_ref[...],
                 preferred_element_type=jnp.float32) + b1_ref[...]
    h1 = jnp.maximum(h1, 0.0)

    # Layer 2: (tb,256) @ (256,256) with bf16 MXU operands, f32 accumulation.
    h2 = jnp.dot(h1.astype(jnp.bfloat16), w2_ref[...],
                 preferred_element_type=jnp.float32) + b2_ref[...]
    h2 = jnp.maximum(h2, 0.0)

    # Layer 3: N=1 output computed as a normal MXU matmul against a zero-padded
    # (256,128) w3 (real weights in lane 0).  Avoids the XLU cross-lane reduce and
    # gives an unmasked, lane-dense output store.
    out = jnp.dot(h2.astype(jnp.bfloat16), w3_ref[...],
                  preferred_element_type=jnp.float32) + b3_ref[...]
    o_ref[...] = out.astype(o_ref.dtype)


def _choose_batch_tile(B):
    # Small batches: one whole-batch block (block_shape == array shape, no (8,128) issue).
    if B <= 256:
        return B
    # Otherwise: large tiles rounded up to 256, but at least 2 grid steps so v7x can
    # shard batch tiles across its 2 TensorCores.  Cap keeps VMEM comfortable on all
    # generations (tb=2048 -> ~10 MiB of blocks + temporaries).
    half = (B + 1) // 2
    tb = ((half + 255) // 256) * 256
    return min(tb, 2048)


def discriminator_forward(state, action, params, *, batch_tile=None):
    """state: (B, STATE_DIM), action: (B, ACTION_DIM) -> (B, 1) float32."""
    w1, b1, w2, b2, w3, b3 = params
    B = state.shape[0]

    # Wrapper-side prep: concat once (trivial XLA op), cast MXU operands.
    x = jnp.concatenate([state, action], axis=1).astype(jnp.float32)   # (B, 4)
    w1f = w1.astype(jnp.float32)                                       # (4, 256)
    b1f = b1.astype(jnp.float32)                                       # (1, 256)
    w2b = w2.astype(jnp.bfloat16)                                      # (256, 256)
    b2f = b2.astype(jnp.float32)                                       # (1, 256)
    # Zero-pad w3 / b3 to 128 lanes, real column in lane 0.
    w3p = jnp.zeros((HIDDEN_DIM, OUT_LANES), jnp.bfloat16).at[:, 0].set(
        w3[:, 0].astype(jnp.bfloat16))
    b3p = jnp.zeros((1, OUT_LANES), jnp.float32).at[0, 0].set(b3[0, 0])

    tb = _choose_batch_tile(B) if batch_tile is None else batch_tile
    grid = (pl.cdiv(B, tb),)

    flops = 2 * B * (IN_DIM * HIDDEN_DIM + HIDDEN_DIM * HIDDEN_DIM + HIDDEN_DIM * OUT_LANES)
    bytes_accessed = (B * IN_DIM * 4 + B * OUT_LANES * 4
                      + IN_DIM * HIDDEN_DIM * 4
                      + HIDDEN_DIM * HIDDEN_DIM * 2
                      + HIDDEN_DIM * OUT_LANES * 2
                      + 2 * HIDDEN_DIM * 4 + OUT_LANES * 4)

    def resident(arr):
        # Constant index_map -> block stays VMEM-resident across grid steps.
        return pl.BlockSpec(arr.shape, lambda i: (0,) * arr.ndim)

    out = pl.pallas_call(
        _discriminator_kernel,
        out_shape=jax.ShapeDtypeStruct((B, OUT_LANES), jnp.float32),
        grid=grid,
        in_specs=[
            pl.BlockSpec((tb, IN_DIM), lambda i: (i, 0)),
            resident(w1f), resident(b1f),
            resident(w2b), resident(b2f),
            resident(w3p), resident(b3p),
        ],
        out_specs=pl.BlockSpec((tb, OUT_LANES), lambda i: (i, 0)),
        compiler_params=pltpu.CompilerParams(
            dimension_semantics=("parallel",),
            vmem_limit_bytes=32 * 1024 * 1024),
        cost_estimate=pl.CostEstimate(flops=flops, transcendentals=0,
                                      bytes_accessed=bytes_accessed),
    )(x, w1f, b1f, w2b, b2f, w3p, b3p)

    # Lane 0 holds the real N=1 output.
    return out[:, :1]


def init_params(key, state_dim=STATE_DIM, action_dim=ACTION_DIM, hidden_dim=HIDDEN_DIM):
    """PyTorch nn.Linear-style init (uniform +/- 1/sqrt(fan_in)).

    Weights stored as (in_features, out_features); biases as (1, out_features)."""
    in_dim = state_dim + action_dim
    dims = [(in_dim, hidden_dim), (hidden_dim, hidden_dim), (hidden_dim, 1)]
    params = []
    for (fan_in, fan_out) in dims:
        key, kw, kb = jax.random.split(key, 3)
        bound = 1.0 / jnp.sqrt(fan_in)
        w = jax.random.uniform(kw, (fan_in, fan_out), jnp.float32, -bound, bound)
        b = jax.random.uniform(kb, (1, fan_out), jnp.float32, -bound, bound)
        params += [w, b]
    return tuple(params)


def reference_forward(state, action, params):
    """Pure-JAX f32 reference matching the PyTorch module."""
    w1, b1, w2, b2, w3, b3 = params
    x = jnp.concatenate([state, action], axis=1).astype(jnp.float32)
    h1 = jnp.maximum(x @ w1 + b1, 0.0)
    h2 = jnp.maximum(h1 @ w2 + b2, 0.0)
    return h2 @ w3 + b3


if __name__ == "__main__":
    key = jax.random.PRNGKey(0)
    k_p, k_s, k_a = jax.random.split(key, 3)

    params = init_params(k_p)

    # Primary check: small batch, single whole-batch block.
    batch = 8
    state = jax.random.normal(k_s, (batch, STATE_DIM), jnp.float32)
    action = jax.random.normal(k_a, (batch, ACTION_DIM), jnp.float32)
    out = jax.block_until_ready(discriminator_forward(state, action, params))
    ref = reference_forward(state, action, params)
    assert out.shape == (batch, 1)
    # bf16 layer-2/3 operands -> looser tolerance vs the f32 reference.
    assert jnp.allclose(out, ref, atol=2e-2, rtol=2e-2), (out, ref)

    # Secondary check: multi-tile batch (tb=256, grid=(2,)) with a padded final block.
    batch2 = 384
    state2 = jax.random.normal(k_s, (batch2, STATE_DIM), jnp.float32)
    action2 = jax.random.normal(k_a, (batch2, ACTION_DIM), jnp.float32)
    out2 = jax.block_until_ready(discriminator_forward(state2, action2, params))
    ref2 = reference_forward(state2, action2, params)
    assert out2.shape == (batch2, 1)
    assert jnp.allclose(out2, ref2, atol=2e-2, rtol=2e-2)

    print("KERNEL_OK")
</pallas_src>

<mosaic_0001>
module attributes {stable_mosaic.version = 11 : i64} {
  func.func @_discriminator_kernel(%arg0: i32, %arg1: memref<8x4xf32, #tpu.memory_space<vmem>>, %arg2: memref<4x256xf32, #tpu.memory_space<vmem>>, %arg3: memref<1x256xf32, #tpu.memory_space<vmem>>, %arg4: memref<256x256xbf16, #tpu.memory_space<vmem>>, %arg5: memref<1x256xf32, #tpu.memory_space<vmem>>, %arg6: memref<256x128xbf16, #tpu.memory_space<vmem>>, %arg7: memref<1x128xf32, #tpu.memory_space<vmem>>, %arg8: memref<8x128xf32, #tpu.memory_space<vmem>>) attributes {dimension_semantics = [#tpu.dimension_semantics<parallel>], iteration_bounds = array<i64: 1>, scalar_prefetch = 0 : i64, scratch_operands = 0 : i64, tpu.core_type = #tpu.core_type<tc>, window_params = [{transform_indices = @transform_0, window_bounds = array<i64: 8, 4>}, {pipeline_mode = #tpu.pipeline_mode<synchronous>, transform_indices = @transform_1, window_bounds = array<i64: 4, 256>}, {pipeline_mode = #tpu.pipeline_mode<synchronous>, transform_indices = @transform_2, window_bounds = array<i64: 1, 256>}, {pipeline_mode = #tpu.pipeline_mode<synchronous>, transform_indices = @transform_3, window_bounds = array<i64: 256, 256>}, {pipeline_mode = #tpu.pipeline_mode<synchronous>, transform_indices = @transform_4, window_bounds = array<i64: 1, 256>}, {pipeline_mode = #tpu.pipeline_mode<synchronous>, transform_indices = @transform_5, window_bounds = array<i64: 256, 128>}, {pipeline_mode = #tpu.pipeline_mode<synchronous>, transform_indices = @transform_6, window_bounds = array<i64: 1, 128>}, {transform_indices = @transform_7, window_bounds = array<i64: 8, 128>}]} {
    %c0 = arith.constant 0 : index
    %c0_0 = arith.constant 0 : index
    %0 = vector.load %arg1[%c0, %c0_0] : memref<8x4xf32, #tpu.memory_space<vmem>>, vector<8x4xf32>
    %c0_1 = arith.constant 0 : index
    %c0_2 = arith.constant 0 : index
    %1 = vector.load %arg2[%c0_1, %c0_2] : memref<4x256xf32, #tpu.memory_space<vmem>>, vector<4x256xf32>
    %cst = arith.constant dense<0.000000e+00> : vector<8x256xf32>
    %2 = tpu.matmul %0, %1, %cst {dimension_numbers = #tpu.dot_dimension_numbers<[1], [0], [0], [1], [0, 0, 1, 1], [], []>} : vector<8x4xf32>, vector<4x256xf32>, vector<8x256xf32> -> vector<8x256xf32>
    %c0_3 = arith.constant 0 : index
    %c0_4 = arith.constant 0 : index
    %3 = vector.load %arg3[%c0_3, %c0_4] : memref<1x256xf32, #tpu.memory_space<vmem>>, vector<1x256xf32>
    %4 = vector.broadcast %3 : vector<1x256xf32> to vector<8x256xf32>
    %5 = arith.addf %2, %4 : vector<8x256xf32>
    %cst_5 = arith.constant 0.000000e+00 : f32
    %6 = vector.broadcast %cst_5 : f32 to vector<8x256xf32>
    %7 = arith.maximumf %5, %6 : vector<8x256xf32>
    %8 = arith.truncf %7 : vector<8x256xf32> to vector<8x256xbf16>
    %c0_6 = arith.constant 0 : index
    %c0_7 = arith.constant 0 : index
    %9 = vector.load %arg4[%c0_6, %c0_7] : memref<256x256xbf16, #tpu.memory_space<vmem>>, vector<256x256xbf16>
    %cst_8 = arith.constant dense<0.000000e+00> : vector<8x256xf32>
    %10 = tpu.matmul %8, %9, %cst_8 {dimension_numbers = #tpu.dot_dimension_numbers<[1], [0], [0], [1], [0, 0, 1, 1], [], []>} : vector<8x256xbf16>, vector<256x256xbf16>, vector<8x256xf32> -> vector<8x256xf32>
    %c0_9 = arith.constant 0 : index
    %c0_10 = arith.constant 0 : index
    %11 = vector.load %arg5[%c0_9, %c0_10] : memref<1x256xf32, #tpu.memory_space<vmem>>, vector<1x256xf32>
    %12 = vector.broadcast %11 : vector<1x256xf32> to vector<8x256xf32>
    %13 = arith.addf %10, %12 : vector<8x256xf32>
    %cst_11 = arith.constant 0.000000e+00 : f32
    %14 = vector.broadcast %cst_11 : f32 to vector<8x256xf32>
    %15 = arith.maximumf %13, %14 : vector<8x256xf32>
    %16 = arith.truncf %15 : vector<8x256xf32> to vector<8x256xbf16>
    %c0_12 = arith.constant 0 : index
    %c0_13 = arith.constant 0 : index
    %17 = vector.load %arg6[%c0_12, %c0_13] : memref<256x128xbf16, #tpu.memory_space<vmem>>, vector<256x128xbf16>
    %cst_14 = arith.constant dense<0.000000e+00> : vector<8x128xf32>
    %18 = tpu.matmul %16, %17, %cst_14 {dimension_numbers = #tpu.dot_dimension_numbers<[1], [0], [0], [1], [0, 0, 1, 1], [], []>} : vector<8x256xbf16>, vector<256x128xbf16>, vector<8x128xf32> -> vector<8x128xf32>
    %c0_15 = arith.constant 0 : index
    %c0_16 = arith.constant 0 : index
    %19 = vector.load %arg7[%c0_15, %c0_16] : memref<1x128xf32, #tpu.memory_space<vmem>>, vector<1x128xf32>
    %20 = vector.broadcast %19 : vector<1x128xf32> to vector<8x128xf32>
    %21 = arith.addf %18, %20 : vector<8x128xf32>
    %c0_17 = arith.constant 0 : index
    %c0_18 = arith.constant 0 : index
    %22 = vector.load %arg8[%c0_17, %c0_18] : memref<8x128xf32, #tpu.memory_space<vmem>>, vector<8x128xf32>
    tpu.vector_store %arg8[%c0_17, %c0_18], %21 {strides = array<i32>} : memref<8x128xf32, #tpu.memory_space<vmem>>, vector<8x128xf32>,
    return
  }
  func.func @transform_0(%arg0: i32) -> (i32, i32) {
    %c0_i32 = arith.constant 0 : i32
    %c0_i32_0 = arith.constant 0 : i32
    return %arg0, %c0_i32 : i32, i32
  }
  func.func @transform_1(%arg0: i32) -> (i32, i32) {
    %c0_i32 = arith.constant 0 : i32
    %c0_i32_0 = arith.constant 0 : i32
    %c0_i32_1 = arith.constant 0 : i32
    return %c0_i32, %c0_i32_0 : i32, i32
  }
  func.func @transform_2(%arg0: i32) -> (i32, i32) {
    %c0_i32 = arith.constant 0 : i32
    %c0_i32_0 = arith.constant 0 : i32
    %c0_i32_1 = arith.constant 0 : i32
    return %c0_i32, %c0_i32_0 : i32, i32
  }
  func.func @transform_3(%arg0: i32) -> (i32, i32) {
    %c0_i32 = arith.constant 0 : i32
    %c0_i32_0 = arith.constant 0 : i32
    %c0_i32_1 = arith.constant 0 : i32
    return %c0_i32, %c0_i32_0 : i32, i32
  }
  func.func @transform_4(%arg0: i32) -> (i32, i32) {
    %c0_i32 = arith.constant 0 : i32
    %c0_i32_0 = arith.constant 0 : i32
    %c0_i32_1 = arith.constant 0 : i32
    return %c0_i32, %c0_i32_0 : i32, i32
  }
  func.func @transform_5(%arg0: i32) -> (i32, i32) {
    %c0_i32 = arith.constant 0 : i32
    %c0_i32_0 = arith.constant 0 : i32
    %c0_i32_1 = arith.constant 0 : i32
    return %c0_i32, %c0_i32_0 : i32, i32
  }
  func.func @transform_6(%arg0: i32) -> (i32, i32) {
    %c0_i32 = arith.constant 0 : i32
    %c0_i32_0 = arith.constant 0 : i32
    %c0_i32_1 = arith.constant 0 : i32
    return %c0_i32, %c0_i32_0 : i32, i32
  }
  func.func @transform_7(%arg0: i32) -> (i32, i32) {
    %c0_i32 = arith.constant 0 : i32
    %c0_i32_0 = arith.constant 0 : i32
    return %arg0, %c0_i32 : i32, i32
  }
}

</mosaic_0001>

<bundles_post_ra>
// kernel: tpu_custom_call.1
= control target key start
LH: loop header
LB: loop body
LE: loop exit
PB: predicated region body
PF: predicated region fallthrough
CT: control target
= control target key end

     0   :  { %12 = vsyncpa [#allocation3], 0  ;;  %s960_s0 = inlined_call_operand.vmem [shape: f32[8,4], index: 0, kind: input, shape index: {}]   ;;  %s961_s1 = inlined_call_operand.vmem [shape: f32[4,256], index: 1, kind: input, shape index: {}]   ;;  %s962_s2 = inlined_call_operand.vmem [shape: f32[1,256], index: 2, kind: input, shape index: {}]   ;;  %s963_s3 = inlined_call_operand.hbm [shape: bf16[256,256], index: 3, kind: input, shape index: {}]   ;;  %s964_s4 = inlined_call_operand.vmem [shape: f32[1,256], index: 4, kind: input, shape index: {}]   ;;  %s965_s5 = inlined_call_operand.hbm [shape: bf16[256,128], index: 5, kind: input, shape index: {}]   ;;  %s966_s6 = inlined_call_operand.vmem [shape: f32[1,128], index: 6, kind: input, shape index: {}]   ;;  %s967_s7 = inlined_call_operand.hbm [shape: f32[8,128], index: 7, kind: output, shape index: {}]  }
   0x1   :  { %13 = vsyncpa [#allocation6], 0 }
   0x2   :  { %14 = vsyncpa [#allocation4], 0  ;;  %s25_s26 = sshll.u32 %s963_s3, 4  ;;  %s885_s27 = smov [#allocation2]   ;;  %s26_s26 = int_to_ptr.hbm [resolvable:$true] %s25_s26 }
   0x3   :  { %s27_s28 = sshll.u32 %s885_s27, 4  ;;  %s40_s8 = sshll.u32 %s965_s5, 4  ;;  %s28_s28 = int_to_ptr.vmem [resolvable:$true] %s27_s28  ;;  %s41_s8 = int_to_ptr.hbm [resolvable:$true] %s40_s8 }
   0x4   :  { %s886_s9 = smov 128   ;;  %s887_s10 = smov 8  }
   0x5   :  { %33 = dma.hbm_to_vmem [thread:$0]  %s26_s26, 4096, %s28_s28, [#allocation3], %s886_s9, %s886_s9, %s887_s10  }
   0x6   :  { %s888_s11 = smov [#allocation5]   ;;  %s889_s13 = smov 64  }
   0x7   :  { %s42_s12 = sshll.u32 %s888_s11, 4  ;;  %s890_s14 = smov 4   ;;  %s43_s12 = int_to_ptr.vmem [resolvable:$true] %s42_s12 }
   0x8   :  { %48 = dma.hbm_to_vmem [thread:$0]  %s41_s8, 2048, %s43_s12, [#allocation6], %s889_s13, %s889_s13, %s890_s14  }
   0x9   :  { %879 = dma.done.wait [#allocation3], 4096  }
   0xa   :  { %880 = vsyncadd [#allocation3], 4294963200 }
   0xb   :  { %881 = dma.done.wait [#allocation6], 2048  }
   0xc   :  { %882 = vsyncadd [#allocation6], 4294965248  ;;  %v60_v0 = vld [vmem:[%s961_s1] sm:$0xff]  ;;  %v617_v1 = vld [vmem:[#allocation2 + $0x70] sm:$0xf]  ;;  %vm75_vm0 = vcmask 1043456  }
   0xd   :  { %68 = vst [vmem:[#allocation1] ss:$2 sm:$0xff] %v60_v0  ;;  %v766_v2 = vld [vmem:[#allocation2 + $0x74] sm:$0xf0]  ;;  %v681_v3 = vld [vmem:[#allocation2 + $0xf0] sm:$0xf] }
   0xe   :  { %v618_v4 = vor.u32 %v766_v2, %v617_v1  ;;  %v782_v5 = vld [vmem:[#allocation2 + $0xf4] sm:$0xf0]  ;;  %v765_v7 = vld [vmem:[#allocation2 + $0x74] sm:$0xf]  ;;  %v619_v8 = vld [vmem:[#allocation2 + $0x78] sm:$0xf0] }
   0xf   :  { %v682_v6 = vor.u32 %v782_v5, %v681_v3  ;;  %v609_v9 = vld [vmem:[#allocation2 + $0x60] sm:$0xf]  ;;  %v781_v10 = vld [vmem:[#allocation2 + $0xf4] sm:$0xf]  ;;  %v683_v11 = vld [vmem:[#allocation2 + $0xf8] sm:$0xf0]  ;;  %v622_v20 = vor.u32 %v765_v7, %v619_v8 }
  0x10   :  { %322 = vmatpush.bf16.msra.mxu2 %v618_v4  ;;  %v764_v12 = vld [vmem:[#allocation2 + $0x64] sm:$0xf0]  ;;  %v59_v13 = vld [vmem:[%s960_s0] sm:$0xff]  ;;  %vm71_vm1 = vcmask 31744   ;;  %v673_v15 = vld [vmem:[#allocation2 + $0xe0] sm:$0xf]  ;;  %v686_v21 = vor.u32 %v781_v10, %v683_v11 }
  0x11   :  { %335 = vmatpush.bf16.msra.mxu3 %v682_v6  ;;  %v610_v14 = vor.u32 %v764_v12, %v609_v9  ;;  %v780_v16 = vld [vmem:[#allocation2 + $0xe4] sm:$0xf0]  ;;  %v763_v17 = vld [vmem:[#allocation2 + $0x64] sm:$0xf]  ;;  %v601_v18 = vld [vmem:[#allocation2 + $0x50] sm:$0xf] }
  0x12   :  { %v762_v19 = vld [vmem:[#allocation2 + $0x54] sm:$0xf0]  ;;  %v611_v22 = vld [vmem:[#allocation2 + $0x68] sm:$0xf0]  ;;  %v779_v23 = vld [vmem:[#allocation2 + $0xe4] sm:$0xf]  ;;  %v674_v27 = vor.u32 %v780_v16, %v673_v15 }
  0x13   :  { %v675_v24 = vld [vmem:[#allocation2 + $0xe8] sm:$0xf0]  ;;  %v602_v28 = vor.u32 %v762_v19, %v601_v18  ;;  %v665_v29 = vld [vmem:[#allocation2 + $0xd0] sm:$0xf]  ;;  %v778_v30 = vld [vmem:[#allocation2 + $0xd4] sm:$0xf0]  ;;  %v614_v33 = vor.u32 %v763_v17, %v611_v22 }
  0x14   :  { %v69_v25 = vld.sshfl [vmem:[#allocation1] sm:$0xff pattern:$0x75316420]  ;;  %v70_v26 = vld.sshfl [vmem:[#allocation1 + $0x8] sm:$0xff pattern:$0x75316420]  ;;  %323 = vmatpush.bf16.msra.mxu2 %v610_v14  ;;  %v678_v34 = vor.u32 %v779_v23, %v675_v24  ;;  %v666_v37 = vor.u32 %v778_v30, %v665_v29 }
  0x15   :  { %555 = vmatpush.msk.msra.mxu0 %vm75_vm0, %v69_v25  ;;  %557 = vmatpush.msk.msra.mxu1 %vm75_vm0, %v70_v26  ;;  %v593_v31 = vld [vmem:[#allocation2 + $0x40] sm:$0xf]  ;;  %v760_v32 = vld [vmem:[#allocation2 + $0x44] sm:$0xf0]  ;;  %v761_v35 = vld [vmem:[#allocation2 + $0x54] sm:$0xf] }
  0x16   :  { %556 = vmatmul.msk.f32.vlgmr.msra.gmra.mxu0 %vm71_vm1, %v59_v13  ;;  %558 = vmatmul.msk.f32.vlgmr.msra.gmra.mxu1 %vm71_vm1, %v59_v13  ;;  %v603_v36 = vld [vmem:[#allocation2 + $0x58] sm:$0xf0]  ;;  %v777_v38 = vld [vmem:[#allocation2 + $0xd4] sm:$0xf]  ;;  %v594_v40 = vor.u32 %v760_v32, %v593_v31  ;;  %v657_v41 = vld [vmem:[#allocation2 + $0xc0] sm:$0xf] }
  0x17   :  { %348 = vmatpush.bf16.msrb.mxu0 %v622_v20  ;;  %361 = vmatpush.bf16.msrb.mxu1 %v686_v21  ;;  %v667_v39 = vld [vmem:[#allocation2 + $0xd8] sm:$0xf0]  ;;  %v776_v42 = vld [vmem:[#allocation2 + $0xc4] sm:$0xf0]  ;;  %v585_v43 = vld [vmem:[#allocation2 + $0x30] sm:$0xf]  ;;  %v606_v45 = vor.u32 %v761_v35, %v603_v36 }
  0x18   :  { %336 = vmatpush.bf16.msra.mxu3 %v674_v27  ;;  %324 = vmatpush.bf16.msra.mxu2 %v602_v28  ;;  %v758_v44 = vld [vmem:[#allocation2 + $0x34] sm:$0xf0]  ;;  %v670_v46 = vor.u32 %v777_v38, %v667_v39  ;;  %v759_v47 = vld [vmem:[#allocation2 + $0x44] sm:$0xf]  ;;  %v595_v48 = vld [vmem:[#allocation2 + $0x48] sm:$0xf0]  ;;  %v658_v49 = vor.u32 %v776_v42, %v657_v41 }
  0x19   :  { %v775_v50 = vld [vmem:[#allocation2 + $0xc4] sm:$0xf]  ;;  %v659_v51 = vld [vmem:[#allocation2 + $0xc8] sm:$0xf0]  ;;  %v586_v52 = vor.u32 %v758_v44, %v585_v43  ;;  %v649_v53 = vld [vmem:[#allocation2 + $0xb0] sm:$0xf]  ;;  %v598_v57 = vor.u32 %v759_v47, %v595_v48 }
  0x1a   :  { %v774_v54 = vld [vmem:[#allocation2 + $0xb4] sm:$0xf0]  ;;  %v577_v55 = vld [vmem:[#allocation2 + $0x20] sm:$0xf]  ;;  %v756_v56 = vld [vmem:[#allocation2 + $0x24] sm:$0xf0]  ;;  %v662_v58 = vor.u32 %v775_v50, %v659_v51 }
  0x1b   :  { %349 = vmatpush.bf16.msrb.mxu0 %v614_v33  ;;  %362 = vmatpush.bf16.msrb.mxu1 %v678_v34  ;;  %v757_v59 = vld [vmem:[#allocation2 + $0x34] sm:$0xf]  ;;  %v650_v60 = vor.u32 %v774_v54, %v649_v53  ;;  %v587_v61 = vld [vmem:[#allocation2 + $0x38] sm:$0xf0]  ;;  %v578_v0 = vor.u32 %v756_v56, %v577_v55  ;;  %v641_v1 = vld [vmem:[#allocation2 + $0xa0] sm:$0xf] }
  0x1c   :  { %337 = vmatpush.bf16.msra.mxu3 %v666_v37  ;;  %325 = vmatpush.bf16.msra.mxu2 %v594_v40  ;;  %v773_v62 = vld [vmem:[#allocation2 + $0xb4] sm:$0xf]  ;;  %v651_v63 = vld [vmem:[#allocation2 + $0xb8] sm:$0xf0]  ;;  %v772_v2 = vld [vmem:[#allocation2 + $0xa4] sm:$0xf0]  ;;  %v590_v3 = vor.u32 %v757_v59, %v587_v61 }
  0x1d   :  { %v654_v4 = vor.u32 %v773_v62, %v651_v63  ;;  %v755_v5 = vld [vmem:[#allocation2 + $0x24] sm:$0xf]  ;;  %v642_v6 = vor.u32 %v772_v2, %v641_v1  ;;  %v579_v7 = vld [vmem:[#allocation2 + $0x28] sm:$0xf0]  ;;  %v569_v12 = vld [vmem:[#allocation2 + $0x10] sm:$0xf] }
  0x1e   :  { %v771_v8 = vld [vmem:[#allocation2 + $0xa4] sm:$0xf]  ;;  %v643_v9 = vld [vmem:[#allocation2 + $0xa8] sm:$0xf0]  ;;  %v582_v10 = vor.u32 %v755_v5, %v579_v7  ;;  %v754_v13 = vld [vmem:[#allocation2 + $0x14] sm:$0xf0] }
  0x1f   :  { %350 = vmatpush.bf16.msrb.mxu0 %v606_v45  ;;  %363 = vmatpush.bf16.msrb.mxu1 %v670_v46  ;;  %v646_v11 = vor.u32 %v771_v8, %v643_v9  ;;  %v633_v14 = vld [vmem:[#allocation2 + $0x90] sm:$0xf]  ;;  %v570_v15 = vor.u32 %v754_v13, %v569_v12  ;;  %v770_v16 = vld [vmem:[#allocation2 + $0x94] sm:$0xf0]  ;;  %v753_v17 = vld [vmem:[#allocation2 + $0x14] sm:$0xf] }
  0x20   :  { %338 = vmatpush.bf16.msra.mxu3 %v658_v49  ;;  %326 = vmatpush.bf16.msra.mxu2 %v586_v52  ;;  %v571_v18 = vld [vmem:[#allocation2 + $0x18] sm:$0xf0]  ;;  %v634_v19 = vor.u32 %v770_v16, %v633_v14  ;;  %v769_v21 = vld [vmem:[#allocation2 + $0x94] sm:$0xf]  ;;  %v561_v24 = vld [vmem:[#allocation2] sm:$0xf] }
  0x21   :  { %v574_v20 = vor.u32 %v753_v17, %v571_v18  ;;  %v635_v22 = vld [vmem:[#allocation2 + $0x98] sm:$0xf0]  ;;  %v752_v25 = vld [vmem:[#allocation2 + $0x4] sm:$0xf0]  ;;  %v625_v26 = vld [vmem:[#allocation2 + $0x80] sm:$0xf] }
  0x22   :  { %v638_v23 = vor.u32 %v769_v21, %v635_v22  ;;  %v562_v27 = vor.u32 %v752_v25, %v561_v24  ;;  %v768_v28 = vld [vmem:[#allocation2 + $0x84] sm:$0xf0]  ;;  %v751_v29 = vld [vmem:[#allocation2 + $0x4] sm:$0xf]  ;;  %v563_v30 = vld [vmem:[#allocation2 + $0x8] sm:$0xf0] }
  0x23   :  { %351 = vmatpush.bf16.msrb.mxu0 %v598_v57  ;;  %364 = vmatpush.bf16.msrb.mxu1 %v662_v58  ;;  %v626_v31 = vor.u32 %v768_v28, %v625_v26  ;;  %v566_v32 = vor.u32 %v751_v29, %v563_v30  ;;  %v767_v33 = vld [vmem:[#allocation2 + $0x84] sm:$0xf]  ;;  %v627_v34 = vld [vmem:[#allocation2 + $0x88] sm:$0xf0]  ;;  %v798_v36 = vld [vmem:[#allocation5 + $0x78] sm:$0xff]  ;;  %s891_s19 = smov [#allocation7]  }
  0x24   :  { %339 = vmatpush.bf16.msra.mxu3 %v650_v60  ;;  %327 = vmatpush.bf16.msra.mxu2 %v578_v0  ;;  %v630_v35 = vor.u32 %v767_v33, %v627_v34  ;;  %v790_v37 = vld [vmem:[#allocation5 + $0x38] sm:$0xff]  ;;  %v797_v38 = vld [vmem:[#allocation5 + $0x70] sm:$0xff]  ;;  %v796_v40 = vld [vmem:[#allocation5 + $0x68] sm:$0xff]  ;;  %s542_s20 = sshll.u32 %s891_s19, 4  ;;  %s544_s23 = sshll.u32 %s967_s7, 4  ;;  %s543_s20 = int_to_ptr.vmem [resolvable:$true] %s542_s20  ;;  %s545_s23 = int_to_ptr.hbm [resolvable:$true] %s544_s23 }
  0x25   :  { %v789_v39 = vld [vmem:[#allocation5 + $0x30] sm:$0xff]  ;;  %v788_v41 = vld [vmem:[#allocation5 + $0x28] sm:$0xff]  ;;  %v795_v42 = vld [vmem:[#allocation5 + $0x60] sm:$0xff] }
  0x26   :  { %v787_v43 = vld [vmem:[#allocation5 + $0x20] sm:$0xff]  ;;  %v794_v44 = vld [vmem:[#allocation5 + $0x58] sm:$0xff]  ;;  %v793_v46 = vld [vmem:[#allocation5 + $0x50] sm:$0xff] }
  0x27   :  { %352 = vmatpush.bf16.msrb.mxu0 %v590_v3  ;;  %365 = vmatpush.bf16.msrb.mxu1 %v654_v4  ;;  %v61_v45 = vld [vmem:[%s962_s2] sm:$0x3]  ;;  %v792_v58 = vld [vmem:[#allocation5 + $0x48] sm:$0xff]  ;;  %v785_v59 = vld [vmem:[#allocation5 + $0x10] sm:$0xff] }
  0x28   :  { %340 = vmatpush.bf16.msra.mxu3 %v642_v6  ;;  %328 = vmatpush.bf16.msra.mxu2 %v570_v15  ;;  %v63_v47 = vperm.slane %v61_v45, 0  ;;  %v64_v48 = vperm.slane %v61_v45, 1  ;;  %v786_v57 = vld [vmem:[#allocation5 + $0x18] sm:$0xff]  ;;  %v791_v60 = vld [vmem:[#allocation5 + $0x40] sm:$0xff]  ;;  %v784_v61 = vld [vmem:[#allocation5 + $0x8] sm:$0xff] }
  0x29   :  { %v783_v62 = vld [vmem:[#allocation5] sm:$0xff]  ;;  %v156_v63 = vld [vmem:[%s964_s4] sm:$0x3] }
  0x2a   :  { %v159_v0 = vperm.slane %v156_v63, 1  ;;  %v158_v4 = vperm.slane %v156_v63, 0 }
  0x2b   :  { %353 = vmatpush.bf16.msrb.mxu0 %v582_v10  ;;  %366 = vmatpush.bf16.msrb.mxu1 %v646_v11 }
  0x2c   :  { %341 = vmatpush.bf16.msra.mxu3 %v634_v19  ;;  %329 = vmatpush.bf16.msra.mxu2 %v562_v27  ;;  %v806_v19 = vld [vmem:[%s966_s6] ss:$0 sm:$0xff] }
  0x2f   :  { %354 = vmatpush.bf16.msrb.mxu0 %v574_v20  ;;  %367 = vmatpush.bf16.msrb.mxu1 %v638_v23 }
  0x30   :  { %342 = vmatpush.bf16.msra.mxu3 %v626_v31  ;;  %510 = vmatpush.bf16.msrb.mxu2 %v790_v37 }
  0x33   :  { %355 = vmatpush.bf16.msrb.mxu0 %v566_v32  ;;  %368 = vmatpush.bf16.msrb.mxu1 %v630_v35 }
  0x34   :  { %523 = vmatpush.bf16.msrb.mxu3 %v798_v36  ;;  %511 = vmatpush.bf16.msrb.mxu2 %v789_v39 }
  0x38   :  { %524 = vmatpush.bf16.msrb.mxu3 %v797_v38  ;;  %512 = vmatpush.bf16.msrb.mxu2 %v788_v41 }
  0x3c   :  { %525 = vmatpush.bf16.msrb.mxu3 %v796_v40  ;;  %513 = vmatpush.bf16.msrb.mxu2 %v787_v43 }
  0x40   :  { %526 = vmatpush.bf16.msrb.mxu3 %v795_v42  ;;  %514 = vmatpush.bf16.msrb.mxu2 %v786_v57 }
  0x44   :  { %527 = vmatpush.bf16.msrb.mxu3 %v794_v44  ;;  %515 = vmatpush.bf16.msrb.mxu2 %v785_v59 }
  0x48   :  { %528 = vmatpush.bf16.msrb.mxu3 %v793_v46  ;;  %516 = vmatpush.bf16.msrb.mxu2 %v784_v61 }
  0x4c   :  { %529 = vmatpush.bf16.msrb.mxu3 %v792_v58  ;;  %517 = vmatpush.bf16.msrb.mxu2 %v783_v62 }
  0x50   :  { %530 = vmatpush.bf16.msrb.mxu3 %v791_v60 }
  0x93   :  { %v97_v49 = vpop.f32.mrf.mxu0  ;;  %v117_v50 = vpop.f32.mrf.mxu1 }
  0x94   :  { %v98_v51 = vadd.f32 %v97_v49, %v63_v47  ;;  %v118_v52 = vadd.f32 %v117_v50, %v64_v48 }
  0x96   :  { %v120_v53 = vmax.f32 %v98_v51, 0.0  ;;  %v121_v54 = vmax.f32 %v118_v52, 0.0 }
  0x98   :  { %v122_v55 = vpack.c.bf16 %v120_v53, %v120_v53  ;;  %v123_v56 = vpack.c.bf16 %v121_v54, %v121_v54 }
  0x9a   :  { %330 = vmatmul.bf16.vlgmr.msra.gmra.mxu2 %v122_v55  ;;  %343 = vmatmul.bf16.vlgmr.msra.gmra.mxu3 %v123_v56 }
  0x9b   :  { %356 = vmatmul.bf16.vlgmr.msrb.gmra.mxu0 %v122_v55  ;;  %369 = vmatmul.bf16.vlgmr.msrb.gmra.mxu1 %v123_v56 }
 0x118   :  { %v357_v1 = vpop.f32.mrf.mxu0  ;;  %v370_v2 = vpop.f32.mrf.mxu1 }
 0x119   :  { %v358_v3 = vadd.f32 %v357_v1, %v159_v0 }
 0x11b   :  { %v371_v5 = vadd.f32 %v370_v2, %v358_v3 }
 0x11d   :  { %v375_v6 = vmax.f32 %v371_v5, 0.0  ;;  %v331_v7 = vpop.f32.mrf.mxu2  ;;  %v344_v8 = vpop.f32.mrf.mxu3 }
 0x11e   :  { %v332_v9 = vadd.f32 %v331_v7, %v158_v4 }
 0x11f   :  { %v377_v10 = vpack.c.bf16 %v375_v6, %v375_v6 }
 0x120   :  { %v345_v11 = vadd.f32 %v344_v8, %v332_v9  ;;  %v359_v12 = vpop.f32.mrf.mxu0  ;;  %v372_v13 = vpop.f32.mrf.mxu1 }
 0x121   :  { %531 = vmatmul.bf16.vlgmr.msrb.gmra.mxu3 %v377_v10 }
 0x122   :  { %v374_v14 = vmax.f32 %v345_v11, 0.0 }
 0x124   :  { %v376_v15 = vpack.c.bf16 %v374_v14, %v374_v14 }
 0x125   :  { %v333_v16 = vpop.f32.mrf.mxu2  ;;  %v346_v17 = vpop.f32.mrf.mxu3 }
 0x126   :  { %518 = vmatmul.bf16.vlgmr.msrb.gmra.mxu2 %v376_v15 }
 0x1a4   :  { %v532_v18 = vpop.f32.mrf.mxu3 }
 0x1a9   :  { %v519_v20 = vpop.f32.mrf.mxu2 }
 0x1aa   :  { %v520_v21 = vadd.f32 %v806_v19, %v519_v20 }
 0x1ac   :  { %v533_v22 = vadd.f32 %v532_v18, %v520_v21  ;;  %v534_v23 = vpop.f32.mrf.mxu3 }
 0x1ae   :  { %536 = vst [vmem:[#allocation7] sm:$0xff] %v533_v22 }
 0x1af   :  { %547 = dma.vmem_to_hbm [thread:$0]  %s543_s20, 128, %s545_s23, [#allocation4]  }
 0x1b1   :  { %v521_v24 = vpop.f32.mrf.mxu2 }
 0x1b2   :  { %883 = dma.done.wait [#allocation4], 128  }
 0x1b3   :  { %884 = vsyncadd [#allocation4], 4294967168 }
 0x1b4   :  { %552 = vsyncpa [#allocation3], 1 }
 0x1b5   :  { %553 = vsyncpa [#allocation6], 1 }
 0x1b6   :  { %554 = vsyncpa [#allocation4], 1 }

</bundles_post_ra>
